<compile_context>
chip_gen: v5e
topology: v5e:2x2
jax: 0.10.0
libtpu: 0.0.40
codegen_flags: <defaults>
</compile_context>

<pallas_src>
import functools

import jax
import jax.numpy as jnp
from jax import lax
from jax.experimental import pallas as pl
from jax.experimental.pallas import tpu as pltpu

LANES = 128
MAX_TILE_ROWS = 2048   # 2048 x 128 f32 = 1 MiB per block (roofline plateau)
GRANULE = 32           # covers f32(8) / bf16,f16(16) / int8,fp8(32) packing and the 4x8 split
SPLIT = 4              # log-fusion factor: product of 4 factors in (1,2] stays <= 16
NCORES = 2             # v7x has 2 TensorCores; extra grid axis is harmless on 1-TC chips
_MASK_NEG = -1e30      # softplus(_MASK_NEG) == 0 exactly in f32


def _round_down(v, m):
    return (v // m) * m


def _sum_softplus_kernel(x_ref, out_ref, acc_ref, *, negate, rows, tile_rows,
                         tiles_per_core, split, needs_mask, fold8):
    c = pl.program_id(0)   # core slice ("parallel")
    k = pl.program_id(1)   # tile loop within the core ("arbitrary" / reduction)

    @pl.when(k == 0)
    def _init():
        acc_ref[...] = jnp.zeros_like(acc_ref)

    s = x_ref[...].astype(jnp.float32)
    if negate:
        s = -s

    if needs_mask:
        # Ragged tail block (and, for odd block counts, the fully-masked clamped
        # duplicate block on the second core): zero its contribution.
        blk = c * tiles_per_core + k
        row_limit = rows - blk * tile_rows
        ridx = lax.broadcasted_iota(jnp.int32, s.shape, 0)
        s = jnp.where(ridx < row_limit, s, jnp.float32(_MASK_NEG))

    # softplus(s) = max(s, 0) + log(1 + exp(-|s|))
    lin = jnp.maximum(s, 0.0)
    if split > 1:
        # Fuse `split` logs into one: log(prod_i (1 + exp(-|s_i|))) -> fewer EUP pushes.
        q = tile_rows // split
        prod = 1.0 + jnp.exp(-jnp.abs(s[0:q]))
        for i in range(1, split):
            prod = prod * (1.0 + jnp.exp(-jnp.abs(s[i * q:(i + 1) * q])))
        lg = jnp.log(prod)
    else:
        lg = jnp.log1p(jnp.exp(-jnp.abs(s)))

    if fold8:
        # Full-vreg VPU adds into the (8, 128) accumulator; no per-tile XLU fold.
        acc_ref[...] += (lin.reshape(-1, 8, LANES).sum(axis=0)
                         + lg.reshape(-1, 8, LANES).sum(axis=0))
    else:
        # Tiny single-block inputs whose row count is not a multiple of 8.
        acc_ref[0:1, :] += (jnp.sum(lin, axis=0, keepdims=True)
                            + jnp.sum(lg, axis=0, keepdims=True))

    @pl.when(k == pl.num_programs(1) - 1)
    def _finalize():
        out_ref[0, 0] = jnp.sum(acc_ref[...])


def _sum_softplus_logits(arr, *, negate):
    """sum(softplus(-arr)) if negate else sum(softplus(arr)), as an f32 scalar."""
    if not jnp.issubdtype(arr.dtype, jnp.floating):
        arr = arr.astype(jnp.float32)
    flat = arr.reshape(-1)
    n = int(flat.shape[0])

    rem = n % LANES
    if rem:
        # TODO(synk): this pad copies the tensor once in HBM; it is only taken
        # when numel is not a multiple of 128 (pad contributes exactly 0, so no
        # in-kernel lane masking is needed).  For f16 inputs the pad value casts
        # to +/-inf, which still yields an exact 0 contribution (no NaNs).
        big = float(jnp.finfo(flat.dtype).max)
        pad_val = big if negate else -big
        flat = jnp.pad(flat, (0, LANES - rem), constant_values=pad_val)

    rows = flat.shape[0] // LANES
    x2d = flat.reshape(rows, LANES)   # free: contiguous, lane-dense

    if rows >= GRANULE:
        tile_rows = min(MAX_TILE_ROWS, _round_down(rows, GRANULE))
        split, fold8 = SPLIT, True
    else:
        tile_rows = rows               # block == full array: always a legal block shape
        split = SPLIT if tile_rows % (8 * SPLIT) == 0 else 1
        fold8 = tile_rows % 8 == 0

    num_blocks = pl.cdiv(rows, tile_rows)
    ncores = NCORES if num_blocks >= NCORES else 1
    tiles_per_core = pl.cdiv(num_blocks, ncores)
    needs_mask = (rows % tile_rows != 0) or (tiles_per_core * ncores != num_blocks)

    kernel = functools.partial(
        _sum_softplus_kernel,
        negate=negate, rows=rows, tile_rows=tile_rows,
        tiles_per_core=tiles_per_core, split=split,
        needs_mask=needs_mask, fold8=fold8)

    last_block = num_blocks - 1
    in_map = lambda c, k: (jnp.minimum(c * tiles_per_core + k, last_block), 0)

    partials = pl.pallas_call(
        kernel,
        out_shape=jax.ShapeDtypeStruct((ncores, 1), jnp.float32),
        grid=(ncores, tiles_per_core),
        in_specs=[pl.BlockSpec((tile_rows, LANES), in_map)],
        out_specs=pl.BlockSpec((1, 1), lambda c, k: (c, 0),
                               memory_space=pltpu.MemorySpace.SMEM),
        scratch_shapes=[pltpu.VMEM((8, LANES), jnp.float32)],
        compiler_params=pltpu.CompilerParams(
            dimension_semantics=("parallel", "arbitrary")),
    )(x2d)
    return jnp.sum(partials)


def charbonnier_loss(x, y, eps=1e-3):
    """Pallas forward of CharbonnierLoss.forward(x, y) == discriminator_loss(x, y)."""
    del eps  # TODO(synk): eps is a module attribute but unused by forward().
    if x.size == 0 or y.size == 0:
        # torch's mean over an empty tensor is NaN; mirror that without a 0-div.
        return jnp.float32(float("nan"))
    real = _sum_softplus_logits(x, negate=True) / x.size    # BCEWithLogits(x, ones).mean()
    fake = _sum_softplus_logits(y, negate=False) / y.size   # BCEWithLogits(y, zeros).mean()
    return real + fake


def _charbonnier_loss_ref(x, y):
    # Plain-JAX reference mirroring the PyTorch forward.
    xf = x.astype(jnp.float32)
    yf = y.astype(jnp.float32)
    return jnp.mean(jax.nn.softplus(-xf)) + jnp.mean(jax.nn.softplus(yf))


if __name__ == "__main__":
    key = jax.random.PRNGKey(0)
    k1, k2, k3, k4 = jax.random.split(key, 4)

    # Small GAN-style logits consistent with the module's forward.
    x = jax.random.normal(k1, (2, 4, 16, 16), jnp.float32) * 2.0
    y = jax.random.normal(k2, (2, 4, 16, 16), jnp.float32) * 2.0
    loss = charbonnier_loss(x, y)
    jax.block_until_ready(loss)
    ref = _charbonnier_loss_ref(x, y)
    assert jnp.allclose(loss, ref, rtol=1e-5, atol=1e-4), (loss, ref)

    # Second case: bf16 input exercising multi-block streaming, 2-core split,
    # tail masking and the 4-way fused-log path; the second tensor has an odd
    # element count (lane-pad path) and a different size than the first.
    xb = jax.random.normal(k3, (4, 4, 160, 128), jnp.bfloat16) * 2.0
    yb = jax.random.normal(k4, (3, 5, 7, 11), jnp.float32) * 2.0
    loss2 = charbonnier_loss(xb, yb)
    jax.block_until_ready(loss2)
    ref2 = _charbonnier_loss_ref(xb, yb)
    assert jnp.allclose(loss2, ref2, rtol=1e-4, atol=1e-3), (loss2, ref2)

    print("KERNEL_OK")
</pallas_src>

<mosaic_0001>
module attributes {stable_mosaic.version = 11 : i64} {
  func.func @_sum_softplus_kernel(%arg0: i32, %arg1: i32, %arg2: memref<16x128xf32, #tpu.memory_space<vmem>>, %arg3: memref<1x1xf32, #tpu.memory_space<smem>>, %arg4: memref<8x128xf32, #tpu.memory_space<vmem>>) attributes {dimension_semantics = [#tpu.dimension_semantics<parallel>, #tpu.dimension_semantics<arbitrary>], iteration_bounds = array<i64: 1, 1>, scalar_prefetch = 0 : i64, scratch_operands = 1 : i64, tpu.core_type = #tpu.core_type<tc>, window_params = [{transform_indices = @transform_0, window_bounds = array<i64: 16, 128>}, {transform_indices = @transform_1, window_bounds = array<i64: 1, 1>}]} {
    %c0_i32 = arith.constant 0 : i32
    %0 = arith.cmpi eq, %arg1, %c0_i32 : i32
    %1 = arith.extui %0 : i1 to i32
    %c0_i32_0 = arith.constant 0 : i32
    %2 = arith.cmpi ne, %1, %c0_i32_0 : i32
    scf.if %2 {
      %cst_12 = arith.constant 0.000000e+00 : f32
      %24 = vector.broadcast %cst_12 : f32 to vector<8x128xf32>
      %c0_13 = arith.constant 0 : index
      %c0_14 = arith.constant 0 : index
      %25 = vector.load %arg4[%c0_13, %c0_14] : memref<8x128xf32, #tpu.memory_space<vmem>>, vector<8x128xf32>
      tpu.vector_store %arg4[%c0_13, %c0_14], %24 {strides = array<i32>} : memref<8x128xf32, #tpu.memory_space<vmem>>, vector<8x128xf32>,
    } else {
    }
    %c0 = arith.constant 0 : index
    %c0_1 = arith.constant 0 : index
    %3 = vector.load %arg2[%c0, %c0_1] : memref<16x128xf32, #tpu.memory_space<vmem>>, vector<16x128xf32>
    %cst = arith.constant 0.000000e+00 : f32
    %4 = vector.broadcast %cst : f32 to vector<16x128xf32>
    %5 = arith.subf %4, %3 : vector<16x128xf32>
    %cst_2 = arith.constant 0.000000e+00 : f32
    %6 = vector.broadcast %cst_2 : f32 to vector<16x128xf32>
    %7 = arith.maximumf %5, %6 : vector<16x128xf32>
    %8 = math.absf %5 : vector<16x128xf32>
    %cst_3 = arith.constant 0.000000e+00 : f32
    %9 = vector.broadcast %cst_3 : f32 to vector<16x128xf32>
    %10 = arith.subf %9, %8 : vector<16x128xf32>
    %11 = math.exp %10 : vector<16x128xf32>
    %12 = math.log1p %11 : vector<16x128xf32>
    %c0_4 = arith.constant 0 : index
    %c0_5 = arith.constant 0 : index
    %13 = vector.load %arg4[%c0_4, %c0_5] : memref<8x128xf32, #tpu.memory_space<vmem>>, vector<8x128xf32>
    %14 = vector.shape_cast %7 : vector<16x128xf32> to vector<2x8x128xf32>
    %cst_6 = arith.constant dense<0.000000e+00> : vector<8x128xf32>
    %15 = vector.multi_reduction <add>, %14, %cst_6 [0] : vector<2x8x128xf32> to vector<8x128xf32>
    %16 = vector.shape_cast %12 : vector<16x128xf32> to vector<2x8x128xf32>
    %cst_7 = arith.constant dense<0.000000e+00> : vector<8x128xf32>
    %17 = vector.multi_reduction <add>, %16, %cst_7 [0] : vector<2x8x128xf32> to vector<8x128xf32>
    %18 = arith.addf %15, %17 : vector<8x128xf32>
    %19 = arith.addf %13, %18 : vector<8x128xf32>
    %c0_8 = arith.constant 0 : index
    %c0_9 = arith.constant 0 : index
    %20 = vector.load %arg4[%c0_8, %c0_9] : memref<8x128xf32, #tpu.memory_space<vmem>>, vector<8x128xf32>
    tpu.vector_store %arg4[%c0_8, %c0_9], %19 {strides = array<i32>} : memref<8x128xf32, #tpu.memory_space<vmem>>, vector<8x128xf32>,
    %c0_i32_10 = arith.constant 0 : i32
    %21 = arith.cmpi eq, %arg1, %c0_i32_10 : i32
    %22 = arith.extui %21 : i1 to i32
    %c0_i32_11 = arith.constant 0 : i32
    %23 = arith.cmpi ne, %22, %c0_i32_11 : i32
    scf.if %23 {
      %c0_12 = arith.constant 0 : index
      %c0_13 = arith.constant 0 : index
      %24 = vector.load %arg4[%c0_12, %c0_13] : memref<8x128xf32, #tpu.memory_space<vmem>>, vector<8x128xf32>
      %25 = vector.shape_cast %24 : vector<8x128xf32> to vector<1x8x128xf32>
      %cst_14 = arith.constant dense<0.000000e+00> : vector<1xf32>
      %26 = vector.multi_reduction <add>, %25, %cst_14 [1, 2] : vector<1x8x128xf32> to vector<1xf32>
      %27 = vector.shape_cast %26 : vector<1xf32> to vector<1x1x1xf32>
      %28 = vector.extract %27[0, 0, 0] : f32 from vector<1x1x1xf32>
      %c0_15 = arith.constant 0 : index
      %c0_16 = arith.constant 0 : index
      %29 = memref.load %arg3[%c0_15, %c0_16] : memref<1x1xf32, #tpu.memory_space<smem>>
      memref.store %28, %arg3[%c0_15, %c0_16] : memref<1x1xf32, #tpu.memory_space<smem>>
    } else {
    }
    return
  }
  func.func @transform_0(%arg0: i32, %arg1: i32) -> (i32, i32) {
    %c1_i32 = arith.constant 1 : i32
    %0 = arith.muli %arg0, %c1_i32 : i32
    %1 = arith.addi %0, %arg1 : i32
    %c0_i32 = arith.constant 0 : i32
    %2 = arith.minsi %1, %c0_i32 : i32
    %c0_i32_0 = arith.constant 0 : i32
    %c0_i32_1 = arith.constant 0 : i32
    return %2, %c0_i32_0 : i32, i32
  }
  func.func @transform_1(%arg0: i32, %arg1: i32) -> (i32, i32) {
    %c0_i32 = arith.constant 0 : i32
    %c0_i32_0 = arith.constant 0 : i32
    return %arg0, %c0_i32 : i32, i32
  }
}

</mosaic_0001>

<bundles_post_ra>
// kernel: tpu_custom_call.1
= control target key start
LH: loop header
LB: loop body
LE: loop exit
PB: predicated region body
PF: predicated region fallthrough
CT: control target
= control target key end

     0   :  { %6 = vsyncpa [#allocation4], 0  ;;  %s185_s0 = inlined_call_operand.hbm [shape: f32[16,128], index: 0, kind: input, shape index: {}]   ;;  %s186_s1 = inlined_call_operand.hbm [shape: f32[1,1], index: 1, kind: output, shape index: {}]  }
   0x1   :  { %7 = vsyncpa [#allocation5], 0  ;;  %s18_s8 = sshll.u32 %s185_s0, 4  ;;  %s165_s9 = smov [#allocation3]   ;;  %s19_s8 = int_to_ptr.hbm [resolvable:$true] %s18_s8 }
   0x2   :  { %s20_s10 = sshll.u32 %s165_s9, 4  ;;  %s166_s11 = smov 128   ;;  %s21_s10 = int_to_ptr.vmem [resolvable:$true] %s20_s10 }
   0x3   :  { %s167_s12 = smov 8  }
   0x4   :  { %26 = dma.hbm_to_vmem [thread:$0]  %s19_s8, 256, %s21_s10, [#allocation4], %s166_s11, %s166_s11, %s167_s12  }
   0x5   :  { %161 = dma.done.wait [#allocation4], 256  }
   0x6   :  { %162 = vsyncadd [#allocation4], 4294967040  ;;  %v40_v0 = vld [vmem:[#allocation3] sm:$0xff]  ;;  %v41_v1 = vld [vmem:[#allocation3 + $0x8] sm:$0xff]  ;;  %s98_s14 = sshll.u32 %s186_s1, 4  ;;  %s168_s16 = smov [#allocation6]   ;;  %s99_s14 = int_to_ptr.hbm [resolvable:$true] %s98_s14 }
   0x7   :  { %v42_v2 = vsub.f32 0.0, %v40_v0  ;;  %v43_v3 = vsub.f32 0.0, %v41_v1 }
   0x9   :  { %v46_v4 = vand.u32 2147483647, %v42_v2  ;;  %v47_v5 = vand.u32 2147483647, %v43_v3  ;;  %v44_v20 = vmax.f32 %v42_v2, 0.0  ;;  %v45_v21 = vmax.f32 %v43_v3, 0.0 }
   0xb   :  { %v48_v6 = vsub.f32 0.0, %v46_v4  ;;  %v49_v7 = vsub.f32 0.0, %v47_v5  ;;  %v73_v29 = vadd.f32 %v45_v21, %v44_v20 }
   0xd   :  { %v50_v8 = vmul.f32 1.442695, %v48_v6  ;;  %v52_v9 = vmul.f32 1.442695, %v49_v7 }
   0xf   :  { %117 = vpow2.f32 %v50_v8 }
  0x10   :  { %119 = vpow2.f32 %v52_v9 }
  0x15   :  { %v118_v10 = vpop.eup %117 }
  0x16   :  { %v120_v11 = vpop.eup %119  ;;  %v54_v12 = vadd.f32 1.0, %v118_v10  ;;  %v57_v13 = vmul.f32 -0.5, %v118_v10  ;;  %v60_v17 = vand.u32 2147483647, %v118_v10 }
  0x17   :  { %v63_v14 = vadd.f32 1.0, %v120_v11  ;;  %v66_v15 = vmul.f32 -0.5, %v120_v11  ;;  %v69_v19 = vand.u32 2147483647, %v120_v11 }
  0x18   :  { %121 = vlog2.f32 %v54_v12  ;;  %v58_v16 = vadd.f32 1.0, %v57_v13  ;;  %vm61_vm0 = vcmp.lt.f32.partialorder %v60_v17, 0.0004427343 }
  0x19   :  { %123 = vlog2.f32 %v63_v14  ;;  %v67_v18 = vadd.f32 1.0, %v66_v15  ;;  %vm70_vm1 = vcmp.lt.f32.partialorder %v69_v19, 0.0004427343 }
  0x1a   :  { %v59_v22 = vmul.f32 %v118_v10, %v58_v16 }
  0x1b   :  { %v68_v24 = vmul.f32 %v120_v11, %v67_v18 }
  0x1e   :  { %v122_v23 = vpop.eup %121 }
  0x1f   :  { %v124_v25 = vpop.eup %123  ;;  %v56_v26 = vmul.f32 0.6931472, %v122_v23 }
  0x20   :  { %v65_v27 = vmul.f32 0.6931472, %v124_v25 }
  0x21   :  { %v62_v28 = vsel %vm61_vm0, %v59_v22, %v56_v26 }
  0x22   :  { %v71_v30 = vsel %vm70_vm1, %v68_v24, %v65_v27 }
  0x23   :  { %v74_v31 = vadd.f32 %v71_v30, %v62_v28 }
  0x25   :  { %v75_v32 = vadd.f32 %v74_v31, %v73_v29 }
  0x27   :  { %82 = vadd.xlane.f32.xlu0 %v75_v32 }
  0x9a   :  { %v83_v33 = vpop.xlane.xlu0 %82 }
  0x9b   :  { %v84_v34 = vrot.slane %v83_v33, 4 }
  0x9d   :  { %v85_v35 = vadd.f32 %v84_v34, %v83_v33 }
  0x9f   :  { %v86_v36 = vrot.slane %v85_v35, 2 }
  0xa1   :  { %v87_v37 = vadd.f32 %v86_v36, %v85_v35 }
  0xa3   :  { %v88_v38 = vrot.slane %v87_v37, 1 }
  0xa5   :  { %v89_v39 = vadd.f32 %v88_v38, %v87_v37 }
  0xa7   :  { %111 = vpush %v89_v39 }
  0xd8   :  { %s112_s15 = spop %111 }
  0xd9   :  { %92 = sst [smem:[#allocation6]] %s112_s15 }
  0xda   :  { %101 = dma.smem_to_hbm %s168_s16, 16, %s99_s14, [#allocation5]  }
  0xdb   :  { %163 = dma.done.wait [#allocation5], 16  }
  0xdc   :  { %164 = vsyncadd [#allocation5], 4294967280 }
  0xdd   :  { %106 = sfence }
  0xde   :  { %107 = vsyncpa [#allocation4], 1 }
  0xdf   :  { %108 = vsyncpa [#allocation5], 1 }

</bundles_post_ra>
